<compile_context>
chip_gen: v5e
topology: v5e:2x2
jax: 0.10.0
libtpu: 0.0.40
codegen_flags: <defaults>
</compile_context>

<pallas_src>
import jax
import jax.numpy as jnp
from jax.experimental import pallas as pl
from jax.experimental.pallas import tpu as pltpu

LANE = 128  # vreg lane width


def _round_up(x, m):
    return ((x + m - 1) // m) * m


def _pad_to(arr, shape):
    pads = [(0, s - d) for d, s in zip(arr.shape, shape)]
    return jnp.pad(arr, pads)


def _pick_batch_tile(B):
    # Largest tile (<= 512) that still yields >= 4 grid steps so both v7x
    # TensorCores get >= 2 pipelined steps each; for small batches just cover
    # the batch in one (8-aligned) step.
    for tb in (512, 256, 128, 64, 32, 16, 8):
        if pl.cdiv(B, tb) >= 4:
            return tb
    return min(512, _round_up(B, 8))


def _mlp_kernel(x_ref, w1_ref, b1_ref, w2_ref, b2_ref, w3_ref, b3_ref, o_ref):
    # Layer 1: bf16 x bf16 -> f32 accumulate on the MXU; f32 epilogue on VPU.
    h1 = jnp.dot(x_ref[...], w1_ref[...], preferred_element_type=jnp.float32)
    h1 = jnp.maximum(h1 + b1_ref[...], 0.0)

    # Layer 2: cast the f32 intermediate to bf16 only for the MXU input.
    h2 = jnp.dot(h1.astype(jnp.bfloat16), w2_ref[...],
                 preferred_element_type=jnp.float32)
    h2 = jnp.maximum(h2 + b2_ref[...], 0.0)

    # Layer 3 + numerically-stable sigmoid (exact reciprocal; EUP has slack).
    z3 = jnp.dot(h2.astype(jnp.bfloat16), w3_ref[...],
                 preferred_element_type=jnp.float32) + b3_ref[...]
    e = jnp.exp(-jnp.abs(z3))
    inv = 1.0 / (1.0 + e)
    o_ref[...] = jnp.where(z3 >= 0.0, inv, e * inv).astype(o_ref.dtype)


def prepare_params(params):
    """One-time layout/dtype prep of torch-convention params.

    Weights are transposed to [in, out], padded to 128 lanes on *output*
    feature dims only, and cast to bf16 (MXU inputs). Biases stay f32 (the
    epilogue is f32). Call this once; reuse the result for every forward.
    """
    w1, b1 = params["w1"], params["b1"]
    w2, b2 = params["w2"], params["b2"]
    w3, b3 = params["w3"], params["b3"]

    h1_size, in_size = w1.shape
    h2_size = w2.shape[0]
    out_size = w3.shape[0]
    h1_p = _round_up(h1_size, LANE)
    h2_p = _round_up(h2_size, LANE)
    out_p = _round_up(out_size, LANE)

    return {
        "w1": _pad_to(w1.T.astype(jnp.bfloat16), (in_size, h1_p)),
        "b1": _pad_to(b1.reshape(1, -1).astype(jnp.float32), (1, h1_p)),
        "w2": _pad_to(w2.T.astype(jnp.bfloat16), (h1_p, h2_p)),
        "b2": _pad_to(b2.reshape(1, -1).astype(jnp.float32), (1, h2_p)),
        "w3": _pad_to(w3.T.astype(jnp.bfloat16), (h2_p, out_p)),
        "b3": _pad_to(b3.reshape(1, -1).astype(jnp.float32), (1, out_p)),
        "out_size": out_size,  # python int (static)
    }


def deeper_network_forward(x, kp):
    """x: [B, input_size]; kp: output of prepare_params()."""
    B, in_size = x.shape
    w1_p, b1_p = kp["w1"], kp["b1"]
    w2_p, b2_p = kp["w2"], kp["b2"]
    w3_p, b3_p = kp["w3"], kp["b3"]
    out_size = kp["out_size"]
    assert w1_p.shape[0] == in_size, "x feature dim mismatch with prepared params"
    h1_p, h2_p, out_p = w1_p.shape[1], w2_p.shape[1], w3_p.shape[1]

    TB = _pick_batch_tile(B)
    B_pad = _round_up(B, TB)

    # Only the batch dim is (possibly) padded; the contraction dim stays as-is.
    x_p = x.astype(jnp.bfloat16)
    if B_pad != B:
        x_p = jnp.pad(x_p, ((0, B_pad - B), (0, 0)))

    grid = (B_pad // TB,)

    # x / output stream over the batch grid; weights & biases stay resident
    # (constant index_map -> loaded once, kept in VMEM across all steps).
    x_spec = pl.BlockSpec((TB, in_size), lambda i: (i, 0))
    o_spec = pl.BlockSpec((TB, out_p), lambda i: (i, 0))
    w_specs = [
        pl.BlockSpec((in_size, h1_p), lambda i: (0, 0)),
        pl.BlockSpec((1, h1_p), lambda i: (0, 0)),
        pl.BlockSpec((h1_p, h2_p), lambda i: (0, 0)),
        pl.BlockSpec((1, h2_p), lambda i: (0, 0)),
        pl.BlockSpec((h2_p, out_p), lambda i: (0, 0)),
        pl.BlockSpec((1, out_p), lambda i: (0, 0)),
    ]

    bf16, f32 = 2, 4
    cost = pl.CostEstimate(
        flops=2 * B_pad * (in_size * h1_p + h1_p * h2_p + h2_p * out_p),
        transcendentals=B_pad * out_p,
        bytes_accessed=(
            bf16 * (B_pad * in_size + in_size * h1_p + h1_p * h2_p + h2_p * out_p)
            + f32 * (h1_p + h2_p + out_p + B_pad * out_p)
        ),
    )

    out_padded = pl.pallas_call(
        _mlp_kernel,
        out_shape=jax.ShapeDtypeStruct((B_pad, out_p), jnp.float32),
        grid=grid,
        in_specs=[x_spec] + w_specs,
        out_specs=o_spec,
        compiler_params=pltpu.CompilerParams(
            dimension_semantics=("parallel",),
            vmem_limit_bytes=32 * 1024 * 1024,
        ),
        cost_estimate=cost,
    )(x_p, w1_p, b1_p, w2_p, b2_p, w3_p, b3_p)

    # Slice off batch padding and the lane padding on the output features.
    return out_padded[:B, :out_size]


def init_params(key, input_size, hidden1, hidden2, output_size):
    """Deterministic init mimicking torch.nn.Linear default (uniform +/- 1/sqrt(fan_in))."""
    ks = jax.random.split(key, 6)

    def linear_init(kw, kb, fan_in, fan_out):
        bound = 1.0 / jnp.sqrt(fan_in)
        w = jax.random.uniform(kw, (fan_out, fan_in), jnp.float32, -bound, bound)
        b = jax.random.uniform(kb, (fan_out,), jnp.float32, -bound, bound)
        return w, b

    w1, b1 = linear_init(ks[0], ks[1], input_size, hidden1)
    w2, b2 = linear_init(ks[2], ks[3], hidden1, hidden2)
    w3, b3 = linear_init(ks[4], ks[5], hidden2, output_size)
    return {"w1": w1, "b1": b1, "w2": w2, "b2": b2, "w3": w3, "b3": b3}


def _reference(x, p):
    h1 = jnp.maximum(x @ p["w1"].T + p["b1"], 0.0)
    h2 = jnp.maximum(h1 @ p["w2"].T + p["b2"], 0.0)
    return jax.nn.sigmoid(h2 @ p["w3"].T + p["b3"])


if __name__ == "__main__":
    # Shapes consistent with the module; batch=512 -> TB=128, grid=(4,), so
    # both v7x TensorCores get 2 pipelined steps each.
    batch, input_size, hidden1, hidden2, output_size = 512, 32, 64, 32, 16

    key = jax.random.PRNGKey(0)
    kx, kp_key = jax.random.split(key)
    x = jax.random.normal(kx, (batch, input_size), jnp.float32)
    params = init_params(kp_key, input_size, hidden1, hidden2, output_size)

    kparams = prepare_params(params)  # one-time layout / dtype prep

    out = deeper_network_forward(x, kparams)
    out = jax.block_until_ready(out)

    ref = _reference(x, params)
    assert out.shape == (batch, output_size)
    # Tolerance covers bf16 MXU inputs (weights/activations); accumulation and
    # the sigmoid epilogue are exact f32.
    assert jnp.allclose(out, ref, atol=3e-2, rtol=3e-2), "mismatch vs reference"

    print("KERNEL_OK")
</pallas_src>

<mosaic_0001>
module attributes {stable_mosaic.version = 11 : i64} {
  func.func @_mlp_kernel(%arg0: i32, %arg1: memref<128x32xbf16, #tpu.memory_space<vmem>>, %arg2: memref<32x128xbf16, #tpu.memory_space<vmem>>, %arg3: memref<1x128xf32, #tpu.memory_space<vmem>>, %arg4: memref<128x128xbf16, #tpu.memory_space<vmem>>, %arg5: memref<1x128xf32, #tpu.memory_space<vmem>>, %arg6: memref<128x128xbf16, #tpu.memory_space<vmem>>, %arg7: memref<1x128xf32, #tpu.memory_space<vmem>>, %arg8: memref<128x128xf32, #tpu.memory_space<vmem>>) attributes {dimension_semantics = [#tpu.dimension_semantics<parallel>], iteration_bounds = array<i64: 4>, scalar_prefetch = 0 : i64, scratch_operands = 0 : i64, tpu.core_type = #tpu.core_type<tc>, window_params = [{transform_indices = @transform_0, window_bounds = array<i64: 128, 32>}, {pipeline_mode = #tpu.pipeline_mode<synchronous>, transform_indices = @transform_1, window_bounds = array<i64: 32, 128>}, {pipeline_mode = #tpu.pipeline_mode<synchronous>, transform_indices = @transform_2, window_bounds = array<i64: 1, 128>}, {pipeline_mode = #tpu.pipeline_mode<synchronous>, transform_indices = @transform_3, window_bounds = array<i64: 128, 128>}, {pipeline_mode = #tpu.pipeline_mode<synchronous>, transform_indices = @transform_4, window_bounds = array<i64: 1, 128>}, {pipeline_mode = #tpu.pipeline_mode<synchronous>, transform_indices = @transform_5, window_bounds = array<i64: 128, 128>}, {pipeline_mode = #tpu.pipeline_mode<synchronous>, transform_indices = @transform_6, window_bounds = array<i64: 1, 128>}, {transform_indices = @transform_7, window_bounds = array<i64: 128, 128>}]} {
    %c0 = arith.constant 0 : index
    %c0_0 = arith.constant 0 : index
    %0 = vector.load %arg1[%c0, %c0_0] : memref<128x32xbf16, #tpu.memory_space<vmem>>, vector<128x32xbf16>
    %c0_1 = arith.constant 0 : index
    %c0_2 = arith.constant 0 : index
    %1 = vector.load %arg2[%c0_1, %c0_2] : memref<32x128xbf16, #tpu.memory_space<vmem>>, vector<32x128xbf16>
    %cst = arith.constant dense<0.000000e+00> : vector<128x128xf32>
    %2 = tpu.matmul %0, %1, %cst {dimension_numbers = #tpu.dot_dimension_numbers<[1], [0], [0], [1], [0, 0, 1, 1], [], []>} : vector<128x32xbf16>, vector<32x128xbf16>, vector<128x128xf32> -> vector<128x128xf32>
    %c0_3 = arith.constant 0 : index
    %c0_4 = arith.constant 0 : index
    %3 = vector.load %arg3[%c0_3, %c0_4] : memref<1x128xf32, #tpu.memory_space<vmem>>, vector<1x128xf32>
    %4 = vector.broadcast %3 : vector<1x128xf32> to vector<128x128xf32>
    %5 = arith.addf %2, %4 : vector<128x128xf32>
    %cst_5 = arith.constant 0.000000e+00 : f32
    %6 = vector.broadcast %cst_5 : f32 to vector<128x128xf32>
    %7 = arith.maximumf %5, %6 : vector<128x128xf32>
    %8 = arith.truncf %7 : vector<128x128xf32> to vector<128x128xbf16>
    %c0_6 = arith.constant 0 : index
    %c0_7 = arith.constant 0 : index
    %9 = vector.load %arg4[%c0_6, %c0_7] : memref<128x128xbf16, #tpu.memory_space<vmem>>, vector<128x128xbf16>
    %cst_8 = arith.constant dense<0.000000e+00> : vector<128x128xf32>
    %10 = tpu.matmul %8, %9, %cst_8 {dimension_numbers = #tpu.dot_dimension_numbers<[1], [0], [0], [1], [0, 0, 1, 1], [], []>} : vector<128x128xbf16>, vector<128x128xbf16>, vector<128x128xf32> -> vector<128x128xf32>
    %c0_9 = arith.constant 0 : index
    %c0_10 = arith.constant 0 : index
    %11 = vector.load %arg5[%c0_9, %c0_10] : memref<1x128xf32, #tpu.memory_space<vmem>>, vector<1x128xf32>
    %12 = vector.broadcast %11 : vector<1x128xf32> to vector<128x128xf32>
    %13 = arith.addf %10, %12 : vector<128x128xf32>
    %cst_11 = arith.constant 0.000000e+00 : f32
    %14 = vector.broadcast %cst_11 : f32 to vector<128x128xf32>
    %15 = arith.maximumf %13, %14 : vector<128x128xf32>
    %16 = arith.truncf %15 : vector<128x128xf32> to vector<128x128xbf16>
    %c0_12 = arith.constant 0 : index
    %c0_13 = arith.constant 0 : index
    %17 = vector.load %arg6[%c0_12, %c0_13] : memref<128x128xbf16, #tpu.memory_space<vmem>>, vector<128x128xbf16>
    %cst_14 = arith.constant dense<0.000000e+00> : vector<128x128xf32>
    %18 = tpu.matmul %16, %17, %cst_14 {dimension_numbers = #tpu.dot_dimension_numbers<[1], [0], [0], [1], [0, 0, 1, 1], [], []>} : vector<128x128xbf16>, vector<128x128xbf16>, vector<128x128xf32> -> vector<128x128xf32>
    %c0_15 = arith.constant 0 : index
    %c0_16 = arith.constant 0 : index
    %19 = vector.load %arg7[%c0_15, %c0_16] : memref<1x128xf32, #tpu.memory_space<vmem>>, vector<1x128xf32>
    %20 = vector.broadcast %19 : vector<1x128xf32> to vector<128x128xf32>
    %21 = arith.addf %18, %20 : vector<128x128xf32>
    %22 = math.absf %21 : vector<128x128xf32>
    %cst_17 = arith.constant 0.000000e+00 : f32
    %23 = vector.broadcast %cst_17 : f32 to vector<128x128xf32>
    %24 = arith.subf %23, %22 : vector<128x128xf32>
    %25 = math.exp %24 : vector<128x128xf32>
    %cst_18 = arith.constant 1.000000e+00 : f32
    %26 = vector.broadcast %cst_18 : f32 to vector<128x128xf32>
    %27 = arith.addf %26, %25 : vector<128x128xf32>
    %cst_19 = arith.constant 1.000000e+00 : f32
    %28 = vector.broadcast %cst_19 : f32 to vector<128x128xf32>
    %29 = arith.divf %28, %27 : vector<128x128xf32>
    %cst_20 = arith.constant 0.000000e+00 : f32
    %30 = vector.broadcast %cst_20 : f32 to vector<128x128xf32>
    %31 = arith.cmpf oge, %21, %30 : vector<128x128xf32>
    %32 = arith.mulf %25, %29 : vector<128x128xf32>
    %33 = arith.select %31, %29, %32 : vector<128x128xi1>, vector<128x128xf32>
    %c0_21 = arith.constant 0 : index
    %c0_22 = arith.constant 0 : index
    %34 = vector.load %arg8[%c0_21, %c0_22] : memref<128x128xf32, #tpu.memory_space<vmem>>, vector<128x128xf32>
    tpu.vector_store %arg8[%c0_21, %c0_22], %33 {strides = array<i32>} : memref<128x128xf32, #tpu.memory_space<vmem>>, vector<128x128xf32>,
    return
  }
  func.func @transform_0(%arg0: i32) -> (i32, i32) {
    %c0_i32 = arith.constant 0 : i32
    %c0_i32_0 = arith.constant 0 : i32
    return %arg0, %c0_i32 : i32, i32
  }
  func.func @transform_1(%arg0: i32) -> (i32, i32) {
    %c0_i32 = arith.constant 0 : i32
    %c0_i32_0 = arith.constant 0 : i32
    %c0_i32_1 = arith.constant 0 : i32
    return %c0_i32, %c0_i32_0 : i32, i32
  }
  func.func @transform_2(%arg0: i32) -> (i32, i32) {
    %c0_i32 = arith.constant 0 : i32
    %c0_i32_0 = arith.constant 0 : i32
    %c0_i32_1 = arith.constant 0 : i32
    return %c0_i32, %c0_i32_0 : i32, i32
  }
  func.func @transform_3(%arg0: i32) -> (i32, i32) {
    %c0_i32 = arith.constant 0 : i32
    %c0_i32_0 = arith.constant 0 : i32
    %c0_i32_1 = arith.constant 0 : i32
    return %c0_i32, %c0_i32_0 : i32, i32
  }
  func.func @transform_4(%arg0: i32) -> (i32, i32) {
    %c0_i32 = arith.constant 0 : i32
    %c0_i32_0 = arith.constant 0 : i32
    %c0_i32_1 = arith.constant 0 : i32
    return %c0_i32, %c0_i32_0 : i32, i32
  }
  func.func @transform_5(%arg0: i32) -> (i32, i32) {
    %c0_i32 = arith.constant 0 : i32
    %c0_i32_0 = arith.constant 0 : i32
    %c0_i32_1 = arith.constant 0 : i32
    return %c0_i32, %c0_i32_0 : i32, i32
  }
  func.func @transform_6(%arg0: i32) -> (i32, i32) {
    %c0_i32 = arith.constant 0 : i32
    %c0_i32_0 = arith.constant 0 : i32
    %c0_i32_1 = arith.constant 0 : i32
    return %c0_i32, %c0_i32_0 : i32, i32
  }
  func.func @transform_7(%arg0: i32) -> (i32, i32) {
    %c0_i32 = arith.constant 0 : i32
    %c0_i32_0 = arith.constant 0 : i32
    return %arg0, %c0_i32 : i32, i32
  }
}

</mosaic_0001>

<bundles_post_ra>
// kernel: tpu_custom_call.1
= control target key start
LH: loop header
LB: loop body
LE: loop exit
PB: predicated region body
PF: predicated region fallthrough
CT: control target
= control target key end

     0   :  { %12 = vsyncpa [#allocation3], 0  ;;  %s1876_s0 = inlined_call_operand.vmem [shape: bf16[512,32], index: 0, kind: input, shape index: {}]   ;;  %s1877_s1 = inlined_call_operand.vmem [shape: bf16[32,128], index: 1, kind: input, shape index: {}]   ;;  %s1878_s2 = inlined_call_operand.vmem [shape: f32[1,128], index: 2, kind: input, shape index: {}]   ;;  %s1879_s3 = inlined_call_operand.vmem [shape: bf16[128,128], index: 3, kind: input, shape index: {}]   ;;  %s1880_s4 = inlined_call_operand.vmem [shape: f32[1,128], index: 4, kind: input, shape index: {}]   ;;  %s1881_s5 = inlined_call_operand.vmem [shape: bf16[128,128], index: 5, kind: input, shape index: {}]   ;;  %s1882_s6 = inlined_call_operand.vmem [shape: f32[1,128], index: 6, kind: input, shape index: {}]   ;;  %s1883_s7 = inlined_call_operand.hbm [shape: f32[512,128], index: 7, kind: output, shape index: {}]  }
   0x1   :  { %14 = vsyncpa [#allocation3 + $0x1], 0  ;;  %s1556_s24 = smov 0   ;;  %s1558_s25 = smov 0  }
   0x2   :  { %s1560_s26 = smov 0   ;;  %s1562_s27 = smov 0  }
   0x3 LB: > { %s1577_s28 = sadd.s32 4294967295, %s1512_s27   ;;  %s1175_s29 = sadd.s32 4294967294, %s1512_s27   ;;  %s1512_s27 = sphi %s1562_s27, %s1889_s27   ;;  %s1508_s26 = sphi %s1560_s26, %s1888_s26   ;;  %s1504_s25 = sphi %s1558_s25, %s1887_s25   ;;  %s1500_s24 = sphi %s1556_s24, %s1886_s24  }
   0x4   : > { %s1581_s30 = sadd.s32 1, %s1512_s27   ;;  %s179_s8 = sadd.s32 1, %s1508_s26 }
   0x5   : > { %s176_s9 = ssub.s32 %s1512_s27, %s1581_s30  ;;  %p189_p0 = scmp.ne.s32.totalorder %s1508_s26, %s1504_s25 }
   0x6   : > { %p177_p1 = scmp.eq.s32.totalorder %s176_s9, 0  ;;  %p190_p2 = scmp.eq.s32.totalorder %s1577_s28, 3 }
   0x7   : > { %p195_p3 = scmp.ne.s32.totalorder %s1504_s25, %s1500_s24  ;;  %p196_p4 = scmp.eq.s32.totalorder %s1175_s29, 3 }
   0x8   : > { %s1592_s10 = scalar_select %p177_p1, %s1508_s26, %s179_s8  }
   0x9   : > { %p1594_p5 = por %p190_p2, %p189_p0  ;;  %p1598_p6 = por %p196_p4, %p195_p3 }
   0xa   : > { %p1178_p7 = scmp.ge.s32.totalorder %s1512_s27, 1  ;;  %p241_p8 = scmp.lt.s32.totalorder %s1512_s27, 5 }
   0xc   : > { %p242_p9 = pnand %p1178_p7, %p241_p8 }
   0xd   : > { %s1180_s15 = sshll.u32 (!%p242_p9), %s1577_s28, 4  ;;  %s1325_s22 = sshll.u32 (!%p242_p9), %s1577_s28, 7 }
   0xe   : > { %245 = sbr.rel (%p242_p9) target bundleno = 606 (0x25e), region = 48  ;;  %p274_p10 = scmp.lt.s32.totalorder (!%p242_p9), %s1180_s15, 63 }
   0xf   : > { %s1109_s8 = scalar_lea.hbm (!%p242_p9), %s1883_s7, %s1325_s22  ;;  %s1470_s17 = scalar_lea.hbm (!%p242_p9), %s1883_s7, 512 }
  0x10   : > { %s1112_s28 = sshll.u32 (!%p242_p9), %s1109_s8, 4  ;;  %s1113_s28 = int_to_ptr.hbm [resolvable:$true] %s1112_s28 }
  0x11   : > { %s1464_s13 = sshra.s32 (!%p242_p9), %s1113_s28, 4  ;;  %s1465_s13 = int_to_ptr.hbm [resolvable:$true] %s1464_s13 }
  0x12   : > { %s1466_s14 = scalar_lea.hbm (!%p242_p9), %s1465_s13, 128  ;;  %p1471_p0 = scmp.lt.s32.totalorder (!%p242_p9), %s1465_s13, %s1883_s7 }
  0x13   : > { %v1308_v0 = vld [vmem:[%s1877_s1 + $0x8] sm:$0xff]  ;;  %v1307_v1 = vld [vmem:[%s1877_s1] sm:$0xff]  ;;  %s1891_s15 = smov (!%p274_p10, %s1180_s15), 63  ;;  %vm357_vm0 = vcmask 261120   ;;  %v1316_v7 = vld [vmem:[%s1879_s3 + $0x38] sm:$0xff]  ;;  %p1467_p11 = scmp.ne.s32.totalorder %s1465_s13, %s1466_s14 }
  0x14   : > { %388 = vmatpush.bf16.msra.mxu0 %v1308_v0  ;;  %s1181_s18 = sshll.u32 %s1891_s15, 2  ;;  %523 = vmatpush.bf16.msra.mxu1 %v1316_v7  ;;  %v1315_v9 = vld [vmem:[%s1879_s3 + $0x30] sm:$0xff]  ;;  %v1314_v10 = vld [vmem:[%s1879_s3 + $0x28] sm:$0xff]  ;;  %v1313_v11 = vld [vmem:[%s1879_s3 + $0x20] sm:$0xff]  ;;  %p1472_p1 = scmp.lt.s32.totalorder %s1470_s17, %s1466_s14 }
  0x15   : > { %s1614_s21 = scalar_lea.vmem %s1876_s0, %s1181_s18  ;;  %1326 = vmatpush.bf16.msra.mxu3 %v1316_v7  ;;  %v1312_v12 = vld [vmem:[%s1879_s3 + $0x18] sm:$0xff]  ;;  %v1311_v14 = vld [vmem:[%s1879_s3 + $0x10] sm:$0xff]  ;;  %v1310_v15 = vld [vmem:[%s1879_s3 + $0x8] sm:$0xff]  ;;  %s270_s18 = sand.u32 1, %s1504_s25  }
  0x16   : > { %v1299_v2 = vld [vmem:[%s1614_s21] sm:$0xff]  ;;  %v1300_v3 = vld [vmem:[%s1614_s21 + $0x8] sm:$0xff]  ;;  %v1301_v4 = vld [vmem:[%s1614_s21 + $0x10] sm:$0xff]  ;;  %s1179_s19 = sshll.u32 %s270_s18, 7  ;;  %p1468_p12 = pnand %p1467_p11, %p1594_p5 }
  0x17   : > { %v1302_v5 = vld [vmem:[%s1614_s21 + $0x18] sm:$0xff]  ;;  %v1303_v6 = vld [vmem:[%s1614_s21 + $0x20] sm:$0xff]  ;;  %v1304_v8 = vld [vmem:[%s1614_s21 + $0x28] sm:$0xff]  ;;  %s1732_s20 = scalar_lea.vmem [#allocation2], %s1179_s19  ;;  %p1473_p2 = por %p1472_p1, %p1471_p0 }
  0x18   : > { %389 = vmatpush.bf16.msra.mxu0 %v1307_v1  ;;  %524 = vmatpush.bf16.msra.mxu1 %v1315_v9  ;;  %v1305_v13 = vld [vmem:[%s1614_s21 + $0x30] sm:$0xff]  ;;  %v1309_v16 = vld [vmem:[%s1879_s3] sm:$0xff]  ;;  %v1306_v17 = vld [vmem:[%s1614_s21 + $0x38] sm:$0xff]  ;;  %s1110_s9 = sshll.u32 %s1732_s20, 4  ;;  %s1098_s21 = scalar_lea.sflag [#allocation3], %s270_s18  ;;  %s1111_s9 = int_to_ptr.vmem [resolvable:$true] %s1110_s9 }
  0x19   : > { %1327 = vmatpush.bf16.msra.mxu3 %v1315_v9  ;;  %v1659_v19 = vld [vmem:[%s1878_s2] ss:$0 sm:$0xff]  ;;  %v1324_v58 = vld [vmem:[%s1881_s5 + $0x38] sm:$0xff]  ;;  %v1323_v62 = vld [vmem:[%s1881_s5 + $0x30] sm:$0xff]  ;;  %p1469_p13 = pneg %p1468_p12 }
  0x1a   : > { %664 = vmatpush.bf16.msra.mxu2 %v1324_v58  ;;  %v1322_v0 = vld [vmem:[%s1881_s5 + $0x28] sm:$0xff]  ;;  %v1321_v1 = vld [vmem:[%s1881_s5 + $0x20] sm:$0xff]  ;;  %v1319_v9 = vld [vmem:[%s1881_s5 + $0x10] sm:$0xff] }
  0x1b   : > { %1222 = vmatmul.msk.bf16.vlgmr.msra.gmra.mxu0 %vm357_vm0, %v1299_v2  ;;  %p1474_p3 = pnand %p1473_p2, %p1469_p13 }
  0x1c   : > { %525 = vmatpush.bf16.msra.mxu1 %v1314_v10 }
  0x1d   : > { %1328 = vmatpush.bf16.msra.mxu3 %v1314_v10 }
  0x1e   : > { %665 = vmatpush.bf16.msra.mxu2 %v1323_v62 }
  0x20   : > { %526 = vmatpush.bf16.msra.mxu1 %v1313_v11 }
  0x21   : > { %1329 = vmatpush.bf16.msra.mxu3 %v1313_v11  ;;  %v1318_v11 = vld [vmem:[%s1881_s5 + $0x8] sm:$0xff] }
  0x22   : > { %666 = vmatpush.bf16.msra.mxu2 %v1322_v0 }
  0x24   : > { %527 = vmatpush.bf16.msra.mxu1 %v1312_v12 }
  0x25   : > { %1330 = vmatpush.bf16.msra.mxu3 %v1312_v12  ;;  %v1317_v12 = vld [vmem:[%s1881_s5] sm:$0xff] }
  0x26   : > { %667 = vmatpush.bf16.msra.mxu2 %v1321_v1 }
  0x28   : > { %528 = vmatpush.bf16.msra.mxu1 %v1311_v14 }
  0x29   : > { %1331 = vmatpush.bf16.msra.mxu3 %v1311_v14 }
  0x2b   : > { %1223 = vmatmul.msk.bf16.gmra.mxu0 %vm357_vm0, %v1300_v3 }
  0x2c   : > { %529 = vmatpush.bf16.msra.mxu1 %v1310_v15 }
  0x2d   : > { %1332 = vmatpush.bf16.msra.mxu3 %v1310_v15 }
  0x30   : > { %530 = vmatpush.bf16.msra.mxu1 %v1309_v16 }
  0x31   : > { %1333 = vmatpush.bf16.msra.mxu3 %v1309_v16 }
  0x35   : > { %1334 = vmatpush.bf16.msrb.mxu3 %v1324_v58 }
  0x39   : > { %1335 = vmatpush.bf16.msrb.mxu3 %v1323_v62 }
  0x3b   : > { %1224 = vmatmul.msk.bf16.gmra.mxu0 %vm357_vm0, %v1301_v4 }
  0x3d   : > { %1336 = vmatpush.bf16.msrb.mxu3 %v1322_v0 }
  0x41   : > { %1337 = vmatpush.bf16.msrb.mxu3 %v1321_v1 }
  0x4b   : > { %1225 = vmatmul.msk.bf16.gmra.mxu0 %vm357_vm0, %v1302_v5  ;;  %v1320_v5 = vld [vmem:[%s1881_s5 + $0x18] sm:$0xff] }
  0x4c   : > { %668 = vmatpush.bf16.msra.mxu2 %v1320_v5  ;;  %1338 = vmatpush.bf16.msrb.mxu3 %v1320_v5 }
  0x50   : > { %669 = vmatpush.bf16.msra.mxu2 %v1319_v9  ;;  %1339 = vmatpush.bf16.msrb.mxu3 %v1319_v9 }
  0x54   : > { %670 = vmatpush.bf16.msra.mxu2 %v1318_v11  ;;  %1340 = vmatpush.bf16.msrb.mxu3 %v1318_v11 }
  0x58   : > { %671 = vmatpush.bf16.msra.mxu2 %v1317_v12  ;;  %1341 = vmatpush.bf16.msrb.mxu3 %v1317_v12  ;;  %v1707_v12 = vld [vmem:[%s1882_s6] ss:$0 sm:$0xff] }
  0x5b   : > { %1226 = vmatmul.msk.bf16.gmra.mxu0 %vm357_vm0, %v1303_v6 }
  0x6b   : > { %1227 = vmatmul.msk.bf16.gmra.mxu0 %vm357_vm0, %v1304_v8 }
  0x7b   : > { %1228 = vmatmul.msk.bf16.gmra.mxu0 %vm357_vm0, %v1305_v13 }
  0x8b   : > { %1229 = vmatmul.msk.bf16.gmra.mxu0 %vm357_vm0, %v1306_v17 }
  0x98   : > { %v391_v18 = vpop.f32.mrf.mxu0 }
  0x99   : > { %v392_v20 = vadd.f32 %v1659_v19, %v391_v18 }
  0x9b   : > { %v431_v23 = vmax.f32 %v392_v20, 0.0 }
  0xa0   : > { %v393_v21 = vpop.f32.mrf.mxu0 }
  0xa1   : > { %v394_v22 = vadd.f32 %v1659_v19, %v393_v21  ;;  %v1384_v21 = vld [vmem:[%s1880_s4] ss:$0 sm:$0xff] }
  0xa3   : > { %v432_v24 = vmax.f32 %v394_v22, 0.0 }
  0xa5   : > { %v447_v25 = vpack.c.bf16 %v432_v24, %v431_v23 }
  0xa7   : > { %531 = vmatmul.bf16.vlgmr.msra.gmra.mxu1 %v447_v25 }
  0xa8   : > { %v396_v26 = vpop.f32.mrf.mxu0 }
  0xa9   : > { %v397_v27 = vadd.f32 %v1659_v19, %v396_v26 }
  0xab   : > { %v433_v30 = vmax.f32 %v397_v27, 0.0 }
  0xb0   : > { %v398_v28 = vpop.f32.mrf.mxu0 }
  0xb1   : > { %v399_v29 = vadd.f32 %v1659_v19, %v398_v28 }
  0xb3   : > { %v434_v31 = vmax.f32 %v399_v29, 0.0 }
  0xb5   : > { %v448_v32 = vpack.c.bf16 %v434_v31, %v433_v30 }
  0xb7   : > { %536 = vmatmul.bf16.gmra.mxu1 %v448_v32 }
  0xb8   : > { %v401_v33 = vpop.f32.mrf.mxu0 }
  0xb9   : > { %v402_v34 = vadd.f32 %v1659_v19, %v401_v33 }
  0xbb   : > { %v435_v37 = vmax.f32 %v402_v34, 0.0 }
  0xc0   : > { %v403_v35 = vpop.f32.mrf.mxu0 }
  0xc1   : > { %v404_v36 = vadd.f32 %v1659_v19, %v403_v35 }
  0xc3   : > { %v436_v38 = vmax.f32 %v404_v36, 0.0 }
  0xc5   : > { %v449_v39 = vpack.c.bf16 %v436_v38, %v435_v37 }
  0xc7   : > { %541 = vmatmul.bf16.gmra.mxu1 %v449_v39 }
  0xc8   : > { %v406_v40 = vpop.f32.mrf.mxu0 }
  0xc9   : > { %v407_v41 = vadd.f32 %v1659_v19, %v406_v40 }
  0xcb   : > { %v437_v44 = vmax.f32 %v407_v41, 0.0 }
  0xd0   : > { %v408_v42 = vpop.f32.mrf.mxu0 }
  0xd1   : > { %v409_v43 = vadd.f32 %v1659_v19, %v408_v42 }
  0xd3   : > { %v438_v45 = vmax.f32 %v409_v43, 0.0 }
  0xd5   : > { %v450_v46 = vpack.c.bf16 %v438_v45, %v437_v44 }
  0xd7   : > { %546 = vmatmul.bf16.gmra.mxu1 %v450_v46 }
  0xd8   : > { %v411_v47 = vpop.f32.mrf.mxu0 }
  0xd9   : > { %v412_v48 = vadd.f32 %v1659_v19, %v411_v47 }
  0xdb   : > { %v439_v51 = vmax.f32 %v412_v48, 0.0 }
  0xe0   : > { %v413_v49 = vpop.f32.mrf.mxu0 }
  0xe1   : > { %v414_v50 = vadd.f32 %v1659_v19, %v413_v49 }
  0xe3   : > { %v440_v52 = vmax.f32 %v414_v50, 0.0 }
  0xe5   : > { %v451_v53 = vpack.c.bf16 %v440_v52, %v439_v51 }
  0xe7   : > { %551 = vmatmul.bf16.gmra.mxu1 %v451_v53 }
  0xe8   : > { %v416_v54 = vpop.f32.mrf.mxu0 }
  0xe9   : > { %v417_v55 = vadd.f32 %v1659_v19, %v416_v54 }
  0xeb   : > { %v441_v59 = vmax.f32 %v417_v55, 0.0 }
  0xf0   : > { %v418_v56 = vpop.f32.mrf.mxu0 }
  0xf1   : > { %v419_v57 = vadd.f32 %v1659_v19, %v418_v56 }
  0xf3   : > { %v442_v60 = vmax.f32 %v419_v57, 0.0 }
  0xf5   : > { %v452_v61 = vpack.c.bf16 %v442_v60, %v441_v59 }
  0xf7   : > { %556 = vmatmul.bf16.gmra.mxu1 %v452_v61 }
  0xf8   : > { %v421_v63 = vpop.f32.mrf.mxu0 }
  0xf9   : > { %v422_v2 = vadd.f32 %v1659_v19, %v421_v63 }
  0xfb   : > { %v443_v6 = vmax.f32 %v422_v2, 0.0 }
 0x100   : > { %v423_v3 = vpop.f32.mrf.mxu0 }
 0x101   : > { %v424_v4 = vadd.f32 %v1659_v19, %v423_v3 }
 0x103   : > { %v444_v7 = vmax.f32 %v424_v4, 0.0 }
 0x105   : > { %v453_v8 = vpack.c.bf16 %v444_v7, %v443_v6 }
 0x107   : > { %561 = vmatmul.bf16.vlgmr.msra.gmra.mxu3 %v453_v8 }
 0x108   : > { %v426_v10 = vpop.f32.mrf.mxu0 }
 0x109   : > { %v427_v13 = vadd.f32 %v1659_v19, %v426_v10 }
 0x10b   : > { %v445_v16 = vmax.f32 %v427_v13, 0.0 }
 0x110   : > { %v428_v14 = vpop.f32.mrf.mxu0 }
 0x111   : > { %v429_v15 = vadd.f32 %v1659_v19, %v428_v14 }
 0x113   : > { %v446_v17 = vmax.f32 %v429_v15, 0.0 }
 0x115   : > { %v454_v18 = vpack.c.bf16 %v446_v17, %v445_v16 }
 0x117   : > { %566 = vmatmul.bf16.gmra.mxu3 %v454_v18 }
 0x124   : > { %v532_v20 = vpop.f32.mrf.mxu1 }
 0x125   : > { %v533_v22 = vadd.f32 %v1384_v21, %v532_v20 }
 0x127   : > { %v572_v25 = vmax.f32 %v533_v22, 0.0 }
 0x12c   : > { %v534_v23 = vpop.f32.mrf.mxu1 }
 0x12d   : > { %v535_v24 = vadd.f32 %v1384_v21, %v534_v23 }
 0x12f   : > { %v573_v26 = vmax.f32 %v535_v24, 0.0 }
 0x131   : > { %v588_v27 = vpack.c.bf16 %v573_v26, %v572_v25 }
 0x133   : > { %672 = vmatmul.bf16.vlgmr.msra.gmra.mxu2 %v588_v27 }
 0x134   : > { %v537_v28 = vpop.f32.mrf.mxu1 }
 0x135   : > { %v538_v29 = vadd.f32 %v1384_v21, %v537_v28 }
 0x137   : > { %v574_v31 = vmax.f32 %v538_v29, 0.0 }
 0x13c   : > { %v539_v30 = vpop.f32.mrf.mxu1 }
 0x13d   : > { %v540_v19 = vadd.f32 %v1384_v21, %v539_v30 }
 0x13f   : > { %v575_v32 = vmax.f32 %v540_v19, 0.0 }
 0x141   : > { %v589_v33 = vpack.c.bf16 %v575_v32, %v574_v31 }
 0x143   : > { %677 = vmatmul.bf16.gmra.mxu2 %v589_v33 }
 0x144   : > { %v542_v34 = vpop.f32.mrf.mxu1 }
 0x145   : > { %v543_v35 = vadd.f32 %v1384_v21, %v542_v34 }
 0x147   : > { %v576_v38 = vmax.f32 %v543_v35, 0.0 }
 0x14c   : > { %v544_v36 = vpop.f32.mrf.mxu1 }
 0x14d   : > { %v545_v37 = vadd.f32 %v1384_v21, %v544_v36 }
 0x14f   : > { %v577_v39 = vmax.f32 %v545_v37, 0.0 }
 0x151   : > { %v590_v40 = vpack.c.bf16 %v577_v39, %v576_v38 }
 0x153   : > { %682 = vmatmul.bf16.gmra.mxu2 %v590_v40 }
 0x154   : > { %v547_v41 = vpop.f32.mrf.mxu1 }
 0x155   : > { %v548_v42 = vadd.f32 %v1384_v21, %v547_v41 }
 0x157   : > { %v578_v45 = vmax.f32 %v548_v42, 0.0 }
 0x15c   : > { %v549_v43 = vpop.f32.mrf.mxu1 }
 0x15d   : > { %v550_v44 = vadd.f32 %v1384_v21, %v549_v43 }
 0x15f   : > { %v579_v46 = vmax.f32 %v550_v44, 0.0 }
 0x161   : > { %v591_v47 = vpack.c.bf16 %v579_v46, %v578_v45 }
 0x163   : > { %687 = vmatmul.bf16.gmra.mxu2 %v591_v47 }
 0x164   : > { %v552_v48 = vpop.f32.mrf.mxu1 }
 0x165   : > { %v553_v49 = vadd.f32 %v1384_v21, %v552_v48 }
 0x167   : > { %v580_v52 = vmax.f32 %v553_v49, 0.0 }
 0x16c   : > { %v554_v50 = vpop.f32.mrf.mxu1 }
 0x16d   : > { %v555_v51 = vadd.f32 %v1384_v21, %v554_v50 }
 0x16f   : > { %v581_v53 = vmax.f32 %v555_v51, 0.0 }
 0x171   : > { %v592_v54 = vpack.c.bf16 %v581_v53, %v580_v52 }
 0x173   : > { %692 = vmatmul.bf16.gmra.mxu2 %v592_v54 }
 0x174   : > { %v557_v55 = vpop.f32.mrf.mxu1 }
 0x175   : > { %v558_v56 = vadd.f32 %v1384_v21, %v557_v55 }
 0x177   : > { %v582_v59 = vmax.f32 %v558_v56, 0.0 }
 0x17c   : > { %v559_v57 = vpop.f32.mrf.mxu1 }
 0x17d   : > { %v560_v58 = vadd.f32 %v1384_v21, %v559_v57 }
 0x17f   : > { %v583_v60 = vmax.f32 %v560_v58, 0.0 }
 0x181   : > { %v593_v61 = vpack.c.bf16 %v583_v60, %v582_v59 }
 0x183   : > { %697 = vmatmul.bf16.gmra.mxu2 %v593_v61 }
 0x18a   : > { %v562_v62 = vpop.f32.mrf.mxu3 }
 0x18b   : > { %v563_v63 = vadd.f32 %v1384_v21, %v562_v62 }
 0x18d   : > { %v584_v2 = vmax.f32 %v563_v63, 0.0 }
 0x192   : > { %v564_v0 = vpop.f32.mrf.mxu3 }
 0x193   : > { %v565_v1 = vadd.f32 %v1384_v21, %v564_v0 }
 0x195   : > { %v585_v3 = vmax.f32 %v565_v1, 0.0 }
 0x197   : > { %v594_v4 = vpack.c.bf16 %v585_v3, %v584_v2 }
 0x199   : > { %702 = vmatmul.bf16.vlgmr.msrb.gmra.mxu3 %v594_v4 }
 0x19a   : > { %v567_v5 = vpop.f32.mrf.mxu3 }
 0x19b   : > { %v568_v6 = vadd.f32 %v1384_v21, %v567_v5 }
 0x19d   : > { %v586_v9 = vmax.f32 %v568_v6, 0.0 }
 0x1a2   : > { %v569_v7 = vpop.f32.mrf.mxu3 }
 0x1a3   : > { %v570_v8 = vadd.f32 %v1384_v21, %v569_v7 }
 0x1a5   : > { %v587_v10 = vmax.f32 %v570_v8, 0.0 }
 0x1a7   : > { %v595_v11 = vpack.c.bf16 %v587_v10, %v586_v9 }
 0x1a9   : > { %707 = vmatmul.bf16.gmra.mxu3 %v595_v11 }
 0x1b6   : > { %v673_v13 = vpop.f32.mrf.mxu2 }
 0x1b7   : > { %v674_v14 = vadd.f32 %v1707_v12, %v673_v13 }
 0x1b9   : > { %v713_v15 = vand.u32 2147483647, %v674_v14  ;;  %vm1033_vm5 = vcmp.ge.f32.partialorder %v674_v14, 0.0 }
 0x1bb   : > { %v729_v16 = vsub.f32 0.0, %v713_v15 }
 0x1bd   : > { %v745_v17 = vmul.f32 1.442695, %v729_v16 }
 0x1be   : > { %v675_v18 = vpop.f32.mrf.mxu2 }
 0x1bf   : > { %1386 = vpow2.f32 %v745_v17  ;;  %v1711_v20 = vadd.f32 %v1707_v12, %v675_v18 }
 0x1c1   : > { %v714_v21 = vand.u32 2147483647, %v1711_v20  ;;  %vm1034_vm10 = vcmp.ge.f32.partialorder %v1711_v20, 0.0 }
 0x1c3   : > { %v730_v22 = vsub.f32 0.0, %v714_v21 }
 0x1c5   : > { %v1387_v23 = vpop.eup %1386  ;;  %v747_v24 = vmul.f32 1.442695, %v730_v22 }
 0x1c6   : > { %v777_v25 = vadd.f32 1.0, %v1387_v23  ;;  %v678_v26 = vpop.f32.mrf.mxu2 }
 0x1c7   : > { %1388 = vpow2.f32 %v747_v24  ;;  %v1715_v27 = vadd.f32 %v1707_v12, %v678_v26 }
 0x1c8   : > { %1390 = vrcp.f32 %v777_v25  ;;  %v804_v38 = vand.u32 2147483648, %v777_v25  ;;  %v802_v40 = vand.u32 2147483647, %v777_v25  ;;  %vm798_vm2 = vweird.f32 %v777_v25 }
 0x1c9   : > { %v715_v28 = vand.u32 2147483647, %v1715_v27  ;;  %vm1035_vm15 = vcmp.ge.f32.partialorder %v1715_v27, 0.0 }
 0x1ca   : > { %v805_v46 = vor.u32 1.1754944e-38, %v804_v38  ;;  %vm803_vm4 = vcmp.eq.f32.partialorder %v802_v40, 8.507059e+37 }
 0x1cb   : > { %v731_v29 = vsub.f32 0.0, %v715_v28 }
 0x1cd   : > { %v1389_v30 = vpop.eup %1388  ;;  %v749_v19 = vmul.f32 1.442695, %v731_v29 }
 0x1ce   : > { %v1391_v31 = vpop.eup %1390  ;;  %v778_v32 = vadd.f32 1.0, %v1389_v30  ;;  %v680_v33 = vpop.f32.mrf.mxu2 }
 0x1cf   : > { %v794_v34 = vmul.f32 %v1391_v31, %v777_v25  ;;  %1392 = vpow2.f32 %v749_v19  ;;  %v1719_v35 = vadd.f32 %v1707_v12, %v680_v33  ;;  %vm799_vm1 = vweird.f32 %v1391_v31 }
 0x1d0   : > { %1394 = vrcp.f32 %v778_v32  ;;  %vm800_vm3 = vmor %vm798_vm2, %vm799_vm1  ;;  %v817_v55 = vand.u32 2147483647, %v778_v32  ;;  %v819_v56 = vand.u32 2147483648, %v778_v32  ;;  %vm813_vm7 = vweird.f32 %v778_v32 }
 0x1d1   : > { %v795_v36 = vsub.f32 1.0, %v794_v34  ;;  %v716_v37 = vand.u32 2147483647, %v1719_v35 }
 0x1d2   : > { %v820_v0 = vor.u32 1.1754944e-38, %v819_v56  ;;  %vm818_vm9 = vcmp.eq.f32.partialorder %v817_v55, 8.507059e+37 }
 0x1d3   : > { %v796_v39 = vmul.f32 %v1391_v31, %v795_v36  ;;  %v732_v41 = vsub.f32 0.0, %v716_v37 }
 0x1d5   : > { %v1723_v42 = vpop.eup %1392  ;;  %v797_v43 = vadd.f32 %v1391_v31, %v796_v39  ;;  %v751_v44 = vmul.f32 1.442695, %v732_v41 }
 0x1d6   : > { %v1395_v45 = vpop.eup %1394  ;;  %v779_v47 = vadd.f32 1.0, %v1723_v42  ;;  %v683_v48 = vpop.f32.mrf.mxu2 }
 0x1d7   : > { %v801_v49 = vsel %vm800_vm3, %v1391_v31, %v797_v43  ;;  %v809_v50 = vmul.f32 %v1395_v45, %v778_v32  ;;  %1396 = vpow2.f32 %v751_v44  ;;  %v1729_v54 = vadd.f32 %v1707_v12, %v683_v48 }
 0x1d8   : > { %v806_v51 = vsel %vm803_vm4, %v805_v46, %v801_v49  ;;  %1398 = vrcp.f32 %v779_v47  ;;  %vm814_vm6 = vweird.f32 %v1395_v45  ;;  %v834_v9 = vand.u32 2147483648, %v779_v47 }
 0x1d9   : > { %v1049_v52 = vmul.f32 %v1387_v23, %v806_v51  ;;  %v810_v53 = vsub.f32 1.0, %v809_v50  ;;  %v717_v59 = vand.u32 2147483647, %v1729_v54  ;;  %vm815_vm8 = vmor %vm813_vm7, %vm814_vm6  ;;  %v832_v14 = vand.u32 2147483647, %v779_v47 }
 0x1da   : > { %vm828_vm12 = vweird.f32 %v779_v47  ;;  %v835_v18 = vor.u32 1.1754944e-38, %v834_v9  ;;  %vm1036_vm4 = vcmp.ge.f32.partialorder %v1719_v35, 0.0 }
 0x1db   : > { %v1065_v57 = vsel %vm1033_vm5, %v806_v51, %v1049_v52  ;;  %v811_v58 = vmul.f32 %v1395_v45, %v810_v53  ;;  %v733_v62 = vsub.f32 0.0, %v717_v59  ;;  %vm833_vm14 = vcmp.eq.f32.partialorder %v832_v14, 8.507059e+37 }
 0x1dc   : > { %1081 = vst [vmem:[%s1732_s20] sm:$0xff] %v1065_v57 }
 0x1dd   : > { %v1735_v60 = vpop.eup %1396  ;;  %v812_v61 = vadd.f32 %v1395_v45, %v811_v58  ;;  %v753_v5 = vmul.f32 1.442695, %v733_v62 }
 0x1de   : > { %v1399_v63 = vpop.eup %1398  ;;  %v780_v1 = vadd.f32 1.0, %v1735_v60  ;;  %v685_v2 = vpop.f32.mrf.mxu2 }
 0x1df   : > { %v816_v3 = vsel %vm815_vm8, %v1395_v45, %v812_v61  ;;  %v824_v4 = vmul.f32 %v1399_v63, %v779_v47  ;;  %v1740_v10 = vadd.f32 %v1707_v12, %v685_v2  ;;  %vm829_vm11 = vweird.f32 %v1399_v63 }
 0x1e0   : > { %v821_v6 = vsel %vm818_vm9, %v820_v0, %v816_v3  ;;  %1400 = vrcp.f32 %v780_v1  ;;  %vm830_vm13 = vmor %vm828_vm12, %vm829_vm11  ;;  %v847_v32 = vand.u32 2147483647, %v780_v1  ;;  %v849_v33 = vand.u32 2147483648, %v780_v1 }
 0x1e1   : > { %v1050_v7 = vmul.f32 %v1389_v30, %v821_v6  ;;  %v825_v8 = vsub.f32 1.0, %v824_v4  ;;  %1402 = vpow2.f32 %v753_v5  ;;  %v718_v15 = vand.u32 2147483647, %v1740_v10 }
 0x1e2   : > { %vm843_vm1 = vweird.f32 %v780_v1  ;;  %v850_v40 = vor.u32 1.1754944e-38, %v849_v33  ;;  %vm848_vm3 = vcmp.eq.f32.partialorder %v847_v32, 8.507059e+37  ;;  %vm1037_vm9 = vcmp.ge.f32.partialorder %v1729_v54, 0.0 }
 0x1e3   : > { %v1066_v11 = vsel %vm1034_vm10, %v821_v6, %v1050_v7  ;;  %v826_v13 = vmul.f32 %v1399_v63, %v825_v8  ;;  %v734_v21 = vsub.f32 0.0, %v718_v15 }
 0x1e4   : > { %1082 = vst [vmem:[%s1732_s20 + $0x8] sm:$0xff] %v1066_v11 }
 0x1e5   : > { %v827_v16 = vadd.f32 %v1399_v63, %v826_v13  ;;  %v755_v29 = vmul.f32 1.442695, %v734_v21 }
 0x1e6   : > { %v1401_v17 = vpop.eup %1400  ;;  %v688_v22 = vpop.f32.mrf.mxu2 }
 0x1e7   : > { %v1744_v23 = vpop.eup %1402  ;;  %v831_v20 = vsel %vm830_vm13, %v1399_v63, %v827_v16  ;;  %v839_v24 = vmul.f32 %v1401_v17, %v780_v1  ;;  %v1747_v25 = vadd.f32 %v1707_v12, %v688_v22  ;;  %vm844_vm0 = vweird.f32 %v1401_v17 }
 0x1e8   : > { %v836_v26 = vsel %vm833_vm14, %v835_v18, %v831_v20  ;;  %v781_v28 = vadd.f32 1.0, %v1744_v23  ;;  %vm845_vm2 = vmor %vm843_vm1, %vm844_vm0  ;;  %vm1038_vm0 = vcmp.ge.f32.partialorder %v1740_v10, 0.0 }
 0x1e9   : > { %v1051_v30 = vmul.f32 %v1723_v42, %v836_v26  ;;  %v840_v19 = vsub.f32 1.0, %v839_v24  ;;  %v719_v31 = vand.u32 2147483647, %v1747_v25 }
 0x1ea   : > { %1404 = vrcp.f32 %v781_v28  ;;  %v864_v53 = vand.u32 2147483648, %v781_v28  ;;  %v862_v57 = vand.u32 2147483647, %v781_v28  ;;  %vm858_vm6 = vweird.f32 %v781_v28 }
 0x1eb   : > { %v1067_v34 = vsel %vm1035_vm15, %v836_v26, %v1051_v30  ;;  %v841_v36 = vmul.f32 %v1401_v17, %v840_v19  ;;  %1406 = vpow2.f32 %v755_v29  ;;  %v735_v37 = vsub.f32 0.0, %v719_v31 }
 0x1ec   : > { %1083 = vst [vmem:[%s1732_s20 + $0x10] sm:$0xff] %v1067_v34  ;;  %v865_v62 = vor.u32 1.1754944e-38, %v864_v53  ;;  %vm863_vm8 = vcmp.eq.f32.partialorder %v862_v57, 8.507059e+37 }
 0x1ed   : > { %v842_v38 = vadd.f32 %v1401_v17, %v841_v36  ;;  %v757_v39 = vmul.f32 1.442695, %v735_v37 }
 0x1ee   : > { %v690_v27 = vpop.f32.mrf.mxu2 }
 0x1ef   : > { %v846_v41 = vsel %vm845_vm2, %v1401_v17, %v842_v38  ;;  %1408 = vpow2.f32 %v757_v39  ;;  %v1755_v42 = vadd.f32 %v1707_v12, %v690_v27 }
 0x1f0   : > { %v1405_v43 = vpop.eup %1404  ;;  %v851_v44 = vsel %vm848_vm3, %v850_v40, %v846_v41  ;;  %vm1039_vm3 = vcmp.ge.f32.partialorder %v1747_v25, 0.0 }
 0x1f1   : > { %v1757_v45 = vpop.eup %1406  ;;  %v1052_v46 = vmul.f32 %v1735_v60, %v851_v44  ;;  %v854_v47 = vmul.f32 %v1405_v43, %v781_v28  ;;  %v720_v48 = vand.u32 2147483647, %v1755_v42  ;;  %vm859_vm5 = vweird.f32 %v1405_v43 }
 0x1f2   : > { %v782_v49 = vadd.f32 1.0, %v1757_v45  ;;  %vm860_vm7 = vmor %vm858_vm6, %vm859_vm5 }
 0x1f3   : > { %v1068_v50 = vsel %vm1036_vm4, %v851_v44, %v1052_v46  ;;  %v855_v51 = vsub.f32 1.0, %v854_v47  ;;  %v736_v52 = vsub.f32 0.0, %v720_v48 }
 0x1f4   : > { %1084 = vst [vmem:[%s1732_s20 + $0x18] sm:$0xff] %v1068_v50  ;;  %1410 = vrcp.f32 %v782_v49  ;;  %v877_v13 = vand.u32 2147483647, %v782_v49  ;;  %v879_v14 = vand.u32 2147483648, %v782_v49  ;;  %vm873_vm11 = vweird.f32 %v782_v49 }
 0x1f5   : > { %v1764_v55 = vpop.eup %1408  ;;  %v856_v56 = vmul.f32 %v1405_v43, %v855_v51  ;;  %v759_v58 = vmul.f32 1.442695, %v736_v52 }
 0x1f6   : > { %v783_v59 = vadd.f32 1.0, %v1764_v55  ;;  %v693_v60 = vpop.f32.mrf.mxu2  ;;  %vm878_vm13 = vcmp.eq.f32.partialorder %v877_v13, 8.507059e+37 }
 0x1f7   : > { %v857_v61 = vadd.f32 %v1405_v43, %v856_v56  ;;  %1412 = vpow2.f32 %v759_v58  ;;  %v1768_v35 = vadd.f32 %v1707_v12, %v693_v60 }
 0x1f8   : > { %1414 = vrcp.f32 %v783_v59  ;;  %v892_v20 = vand.u32 2147483647, %v783_v59  ;;  %v894_v24 = vand.u32 2147483648, %v783_v59  ;;  %vm888_vm15 = vweird.f32 %v783_v59 }
 0x1f9   : > { %v861_v63 = vsel %vm860_vm7, %v1405_v43, %v857_v61  ;;  %v721_v0 = vand.u32 2147483647, %v1768_v35 }
 0x1fa   : > { %v1411_v1 = vpop.eup %1410  ;;  %v866_v2 = vsel %vm863_vm8, %v865_v62, %v861_v63  ;;  %v895_v36 = vor.u32 1.1754944e-38, %v894_v24  ;;  %vm893_vm2 = vcmp.eq.f32.partialorder %v892_v20, 8.507059e+37  ;;  %vm1040_vm8 = vcmp.ge.f32.partialorder %v1755_v42, 0.0 }
 0x1fb   : > { %v1053_v3 = vmul.f32 %v1744_v23, %v866_v2  ;;  %v869_v4 = vmul.f32 %v1411_v1, %v782_v49  ;;  %v737_v5 = vsub.f32 0.0, %v721_v0  ;;  %vm874_vm10 = vweird.f32 %v1411_v1 }
 0x1fc   : > { %vm875_vm12 = vmor %vm873_vm11, %vm874_vm10  ;;  %v880_v23 = vor.u32 1.1754944e-38, %v879_v14 }
 0x1fd   : > { %v1773_v6 = vpop.eup %1412  ;;  %v1069_v7 = vsel %vm1037_vm9, %v866_v2, %v1053_v3  ;;  %v870_v8 = vsub.f32 1.0, %v869_v4  ;;  %v761_v9 = vmul.f32 1.442695, %v737_v5 }
 0x1fe   : > { %v1415_v11 = vpop.eup %1414  ;;  %1085 = vst [vmem:[%s1732_s20 + $0x20] sm:$0xff] %v1069_v7  ;;  %v784_v15 = vadd.f32 1.0, %v1773_v6  ;;  %v695_v16 = vpop.f32.mrf.mxu2 }
 0x1ff   : > { %v871_v17 = vmul.f32 %v1411_v1, %v870_v8  ;;  %v884_v18 = vmul.f32 %v1415_v11, %v783_v59  ;;  %1416 = vpow2.f32 %v761_v9  ;;  %v1778_v22 = vadd.f32 %v1707_v12, %v695_v16 }
 0x200   : > { %1418 = vrcp.f32 %v784_v15  ;;  %vm889_vm14 = vweird.f32 %v1415_v11  ;;  %v907_v10 = vand.u32 2147483647, %v784_v15  ;;  %v909_v46 = vand.u32 2147483648, %v784_v15 }
 0x201   : > { %v872_v21 = vadd.f32 %v1411_v1, %v871_v17  ;;  %v885_v54 = vsub.f32 1.0, %v884_v18  ;;  %v722_v29 = vand.u32 2147483647, %v1778_v22  ;;  %vm890_vm1 = vmor %vm888_vm15, %vm889_vm14  ;;  %vm903_vm5 = vweird.f32 %v784_v15 }
 0x202   : > { %v910_v53 = vor.u32 1.1754944e-38, %v909_v46  ;;  %vm908_vm7 = vcmp.eq.f32.partialorder %v907_v10, 8.507059e+37 }
 0x203   : > { %v876_v26 = vsel %vm875_vm12, %v1411_v1, %v872_v21  ;;  %v886_v28 = vmul.f32 %v1415_v11, %v885_v54  ;;  %v738_v33 = vsub.f32 0.0, %v722_v29 }
 0x204   : > { %v881_v30 = vsel %vm878_vm13, %v880_v23, %v876_v26  ;;  %vm1041_vm13 = vcmp.ge.f32.partialorder %v1768_v35, 0.0 }
 0x205   : > { %v1781_v19 = vpop.eup %1416  ;;  %v1054_v31 = vmul.f32 %v1757_v45, %v881_v30  ;;  %v887_v32 = vadd.f32 %v1415_v11, %v886_v28  ;;  %v763_v45 = vmul.f32 1.442695, %v738_v33 }
 0x206   : > { %v1419_v34 = vpop.eup %1418  ;;  %v785_v37 = vadd.f32 1.0, %v1781_v19  ;;  %v698_v38 = vpop.f32.mrf.mxu2 }
 0x207   : > { %v1070_v39 = vsel %vm1038_vm0, %v881_v30, %v1054_v31  ;;  %v891_v40 = vsel %vm890_vm1, %v1415_v11, %v887_v32  ;;  %v899_v27 = vmul.f32 %v1419_v34, %v784_v15  ;;  %v1790_v47 = vadd.f32 %v1707_v12, %v698_v38 }
 0x208   : > { %1086 = vst [vmem:[%s1732_s20 + $0x28] sm:$0xff] %v1070_v39  ;;  %v896_v41 = vsel %vm893_vm2, %v895_v36, %v891_v40  ;;  %1420 = vrcp.f32 %v785_v37  ;;  %vm904_vm4 = vweird.f32 %v1419_v34  ;;  %v922_v1 = vand.u32 2147483647, %v785_v37 }
 0x209   : > { %v1055_v43 = vmul.f32 %v1764_v55, %v896_v41  ;;  %v900_v44 = vsub.f32 1.0, %v899_v27  ;;  %1422 = vpow2.f32 %v763_v45  ;;  %v723_v50 = vand.u32 2147483647, %v1790_v47  ;;  %vm905_vm6 = vmor %vm903_vm5, %vm904_vm4 }
 0x20a   : > { %v924_v2 = vand.u32 2147483648, %v785_v37  ;;  %vm918_vm10 = vweird.f32 %v785_v37  ;;  %vm923_vm12 = vcmp.eq.f32.partialorder %v922_v1, 8.507059e+37  ;;  %vm1042_vm2 = vcmp.ge.f32.partialorder %v1778_v22, 0.0 }
 0x20b   : > { %v1071_v48 = vsel %vm1039_vm3, %v896_v41, %v1055_v43  ;;  %v901_v49 = vmul.f32 %v1419_v34, %v900_v44  ;;  %v739_v55 = vsub.f32 0.0, %v723_v50 }
 0x20c   : > { %1087 = vst [vmem:[%s1732_s20 + $0x30] sm:$0xff] %v1071_v48  ;;  %v925_v42 = vor.u32 1.1754944e-38, %v924_v2 }
 0x20d   : > { %v902_v51 = vadd.f32 %v1419_v34, %v901_v49  ;;  %v765_v60 = vmul.f32 1.442695, %v739_v55 }
 0x20e   : > { %v1421_v52 = vpop.eup %1420  ;;  %v700_v56 = vpop.f32.mrf.mxu2 }
 0x20f   : > { %v906_v25 = vsel %vm905_vm6, %v1419_v34, %v902_v51  ;;  %v914_v57 = vmul.f32 %v1421_v52, %v785_v37  ;;  %v1795_v58 = vadd.f32 %v1707_v12, %v700_v56  ;;  %v1423_v61 = vpop.eup %1422  ;;  %1424 = vpow2.f32 %v765_v60 }
 0x210   : > { %v911_v59 = vsel %vm908_vm7, %v910_v53, %v906_v25  ;;  %v786_v3 = vadd.f32 1.0, %v1423_v61  ;;  %vm919_vm9 = vweird.f32 %v1421_v52 }
 0x211   : > { %v1056_v62 = vmul.f32 %v1773_v6, %v911_v59  ;;  %v915_v63 = vsub.f32 1.0, %v914_v57  ;;  %v724_v0 = vand.u32 2147483647, %v1795_v58  ;;  %vm920_vm11 = vmor %vm918_vm10, %vm919_vm9 }
 0x212   : > { %1426 = vrcp.f32 %v786_v3  ;;  %v939_v24 = vand.u32 2147483648, %v786_v3  ;;  %v937_v29 = vand.u32 2147483647, %v786_v3  ;;  %vm933_vm15 = vweird.f32 %v786_v3 }
 0x213   : > { %v1072_v4 = vsel %vm1040_vm8, %v911_v59, %v1056_v62  ;;  %v916_v5 = vmul.f32 %v1421_v52, %v915_v63  ;;  %v740_v7 = vsub.f32 0.0, %v724_v0  ;;  %vm1043_vm8 = vcmp.ge.f32.partialorder %v1790_v47, 0.0 }
 0x214   : > { %1088 = vst [vmem:[%s1732_s20 + $0x38] sm:$0xff] %v1072_v4  ;;  %v940_v32 = vor.u32 1.1754944e-38, %v939_v24  ;;  %vm938_vm1 = vcmp.eq.f32.partialorder %v937_v29, 8.507059e+37 }
 0x215   : > { %v917_v8 = vadd.f32 %v1421_v52, %v916_v5  ;;  %v767_v9 = vmul.f32 1.442695, %v740_v7  ;;  %v1801_v11 = vpop.eup %1424 }
 0x216   : > { %v787_v15 = vadd.f32 1.0, %v1801_v11 }
 0x217   : > { %v921_v6 = vsel %vm920_vm11, %v1421_v52, %v917_v8  ;;  %1428 = vpow2.f32 %v767_v9 }
 0x218   : > { %v926_v13 = vsel %vm923_vm12, %v925_v42, %v921_v6  ;;  %v1427_v16 = vpop.eup %1426  ;;  %1430 = vrcp.f32 %v787_v15  ;;  %v954_v27 = vand.u32 2147483648, %v787_v15  ;;  %v952_v45 = vand.u32 2147483647, %v787_v15 }
 0x219   : > { %v1057_v14 = vmul.f32 %v1781_v19, %v926_v13  ;;  %v929_v18 = vmul.f32 %v1427_v16, %v786_v3  ;;  %vm934_vm14 = vweird.f32 %v1427_v16  ;;  %vm948_vm4 = vweird.f32 %v787_v15 }
 0x21a   : > { %vm935_vm0 = vmor %vm933_vm15, %vm934_vm14  ;;  %v955_v50 = vor.u32 1.1754944e-38, %v954_v27  ;;  %vm953_vm6 = vcmp.eq.f32.partialorder %v952_v45, 8.507059e+37  ;;  %vm1044_vm12 = vcmp.ge.f32.partialorder %v1795_v58, 0.0 }
 0x21b   : > { %v1073_v17 = vsel %vm1041_vm13, %v926_v13, %v1057_v14  ;;  %v930_v23 = vsub.f32 1.0, %v929_v18 }
 0x21c   : > { %1089 = vst [vmem:[%s1732_s20 + $0x40] sm:$0xff] %v1073_v17  ;;  %v703_v21 = vpop.f32.mrf.mxu3 }
 0x21d   : > { %v1807_v54 = vpop.eup %1428  ;;  %v1810_v20 = vadd.f32 %v1707_v12, %v703_v21  ;;  %v931_v28 = vmul.f32 %v1427_v16, %v930_v23 }
 0x21e   : > { %v788_v26 = vadd.f32 1.0, %v1807_v54  ;;  %v1431_v35 = vpop.eup %1430 }
 0x21f   : > { %v725_v30 = vand.u32 2147483647, %v1810_v20  ;;  %v932_v19 = vadd.f32 %v1427_v16, %v931_v28  ;;  %v944_v33 = vmul.f32 %v1431_v35, %v787_v15  ;;  %vm949_vm3 = vweird.f32 %v1431_v35 }
 0x220   : > { %1432 = vrcp.f32 %v788_v26  ;;  %vm950_vm5 = vmor %vm948_vm4, %vm949_vm3  ;;  %v967_v55 = vand.u32 2147483647, %v788_v26  ;;  %v969_v56 = vand.u32 2147483648, %v788_v26  ;;  %vm963_vm9 = vweird.f32 %v788_v26 }
 0x221   : > { %v741_v31 = vsub.f32 0.0, %v725_v30  ;;  %v936_v34 = vsel %vm935_vm0, %v1427_v16, %v932_v19  ;;  %v945_v38 = vsub.f32 1.0, %v944_v33 }
 0x222   : > { %v941_v37 = vsel %vm938_vm1, %v940_v32, %v936_v34  ;;  %v970_v2 = vor.u32 1.1754944e-38, %v969_v56  ;;  %vm968_vm11 = vcmp.eq.f32.partialorder %v967_v55, 8.507059e+37  ;;  %vm1045_vm1 = vcmp.ge.f32.partialorder %v1810_v20, 0.0 }
 0x223   : > { %v769_v36 = vmul.f32 1.442695, %v741_v31  ;;  %v1058_v40 = vmul.f32 %v1423_v61, %v941_v37  ;;  %v946_v44 = vmul.f32 %v1431_v35, %v945_v38 }
 0x224   : > { %v705_v39 = vpop.f32.mrf.mxu3 }
 0x225   : > { %1434 = vpow2.f32 %v769_v36  ;;  %v1815_v41 = vadd.f32 %v1707_v12, %v705_v39  ;;  %v1074_v10 = vsel %vm1042_vm2, %v941_v37, %v1058_v40  ;;  %v947_v49 = vadd.f32 %v1431_v35, %v946_v44 }
 0x226   : > { %v1433_v43 = vpop.eup %1432  ;;  %1090 = vst [vmem:[%s1732_s20 + $0x48] sm:$0xff] %v1074_v10 }
 0x227   : > { %v959_v46 = vmul.f32 %v1433_v43, %v788_v26  ;;  %v726_v48 = vand.u32 2147483647, %v1815_v41  ;;  %v951_v53 = vsel %vm950_vm5, %v1431_v35, %v947_v49  ;;  %vm964_vm7 = vweird.f32 %v1433_v43 }
 0x228   : > { %v956_v22 = vsel %vm953_vm6, %v955_v50, %v951_v53  ;;  %vm965_vm10 = vmor %vm963_vm9, %vm964_vm7  ;;  %vm1046_vm6 = vcmp.ge.f32.partialorder %v1815_v41, 0.0 }
 0x229   : > { %v960_v51 = vsub.f32 1.0, %v959_v46  ;;  %v742_v52 = vsub.f32 0.0, %v726_v48  ;;  %v1059_v60 = vmul.f32 %v1801_v11, %v956_v22 }
 0x22b   : > { %v1435_v25 = vpop.eup %1434  ;;  %v961_v57 = vmul.f32 %v1433_v43, %v960_v51  ;;  %v771_v59 = vmul.f32 1.442695, %v742_v52  ;;  %v1075_v1 = vsel %vm1043_vm8, %v956_v22, %v1059_v60 }
 0x22c   : > { %v789_v61 = vadd.f32 1.0, %v1435_v25  ;;  %v708_v62 = vpop.f32.mrf.mxu3  ;;  %1091 = vst [vmem:[%s1732_s20 + $0x50] sm:$0xff] %v1075_v1 }
 0x22d   : > { %v962_v63 = vadd.f32 %v1433_v43, %v961_v57  ;;  %1436 = vpow2.f32 %v771_v59  ;;  %v1823_v0 = vadd.f32 %v1707_v12, %v708_v62 }
 0x22e   : > { %1438 = vrcp.f32 %v789_v61  ;;  %v984_v18 = vand.u32 2147483648, %v789_v61  ;;  %v982_v58 = vand.u32 2147483647, %v789_v61  ;;  %vm978_vm14 = vweird.f32 %v789_v61 }
 0x22f   : > { %v966_v3 = vsel %vm965_vm10, %v1433_v43, %v962_v63  ;;  %v727_v47 = vand.u32 2147483647, %v1823_v0 }
 0x230   : > { %v971_v4 = vsel %vm968_vm11, %v970_v2, %v966_v3  ;;  %v985_v29 = vor.u32 1.1754944e-38, %v984_v18  ;;  %vm983_vm0 = vcmp.eq.f32.partialorder %v982_v58, 8.507059e+37  ;;  %vm1047_vm11 = vcmp.ge.f32.partialorder %v1823_v0, 0.0 }
 0x231   : > { %v1060_v5 = vmul.f32 %v1807_v54, %v971_v4  ;;  %v743_v7 = vsub.f32 0.0, %v727_v47 }
 0x233   : > { %v1437_v8 = vpop.eup %1436  ;;  %v1076_v9 = vsel %vm1044_vm12, %v971_v4, %v1060_v5  ;;  %v773_v42 = vmul.f32 1.442695, %v743_v7 }
 0x234   : > { %v1439_v6 = vpop.eup %1438  ;;  %1092 = vst [vmem:[%s1732_s20 + $0x58] sm:$0xff] %v1076_v9  ;;  %v790_v11 = vadd.f32 1.0, %v1437_v8  ;;  %v710_v13 = vpop.f32.mrf.mxu3 }
 0x235   : > { %v974_v14 = vmul.f32 %v1439_v6, %v789_v61  ;;  %1440 = vpow2.f32 %v773_v42  ;;  %v1831_v15 = vadd.f32 %v1707_v12, %v710_v13  ;;  %vm979_vm13 = vweird.f32 %v1439_v6 }
 0x236   : > { %1442 = vrcp.f32 %v790_v11  ;;  %vm980_vm15 = vmor %vm978_vm14, %vm979_vm13  ;;  %v999_v33 = vand.u32 2147483648, %v790_v11  ;;  %v997_v37 = vand.u32 2147483647, %v790_v11  ;;  %vm993_vm3 = vweird.f32 %v790_v11 }
 0x237   : > { %v975_v16 = vsub.f32 1.0, %v974_v14  ;;  %v728_v17 = vand.u32 2147483647, %v1831_v15 }
 0x238   : > { %v1000_v27 = vor.u32 1.1754944e-38, %v999_v33  ;;  %vm998_vm5 = vcmp.eq.f32.partialorder %v997_v37, 8.507059e+37 }
 0x239   : > { %v976_v21 = vmul.f32 %v1439_v6, %v975_v16  ;;  %v744_v54 = vsub.f32 0.0, %v728_v17 }
 0x23b   : > { %v1441_v23 = vpop.eup %1440  ;;  %v977_v24 = vadd.f32 %v1439_v6, %v976_v21  ;;  %v775_v26 = vmul.f32 1.442695, %v744_v54 }
 0x23c   : > { %v1443_v28 = vpop.eup %1442  ;;  %v791_v30 = vadd.f32 1.0, %v1441_v23 }
 0x23d   : > { %v981_v12 = vsel %vm980_vm15, %v1439_v6, %v977_v24  ;;  %v989_v35 = vmul.f32 %v1443_v28, %v790_v11  ;;  %1444 = vpow2.f32 %v775_v26  ;;  %vm994_vm2 = vweird.f32 %v1443_v28 }
 0x23e   : > { %v986_v19 = vsel %vm983_vm0, %v985_v29, %v981_v12  ;;  %1446 = vrcp.f32 %v791_v30  ;;  %vm995_vm4 = vmor %vm993_vm3, %vm994_vm2  ;;  %v1014_v48 = vand.u32 2147483648, %v791_v30  ;;  %v1012_v51 = vand.u32 2147483647, %v791_v30 }
 0x23f   : > { %v1061_v31 = vmul.f32 %v1435_v25, %v986_v19  ;;  %v990_v32 = vsub.f32 1.0, %v989_v35  ;;  %vm1008_vm8 = vweird.f32 %v791_v30  ;;  %vm1048_vm0 = vcmp.ge.f32.partialorder %v1831_v15, 0.0 }
 0x240   : > { %v1015_v55 = vor.u32 1.1754944e-38, %v1014_v48  ;;  %vm1013_vm10 = vcmp.eq.f32.partialorder %v1012_v51, 8.507059e+37 }
 0x241   : > { %v1077_v34 = vsel %vm1045_vm1, %v986_v19, %v1061_v31  ;;  %v991_v36 = vmul.f32 %v1443_v28, %v990_v32 }
 0x242   : > { %1093 = vst [vmem:[%s1732_s20 + $0x60] sm:$0xff] %v1077_v34 }
 0x243   : > { %v1445_v38 = vpop.eup %1444  ;;  %v992_v39 = vadd.f32 %v1443_v28, %v991_v36 }
 0x244   : > { %v1447_v40 = vpop.eup %1446  ;;  %v792_v43 = vadd.f32 1.0, %v1445_v38 }
 0x245   : > { %v996_v44 = vsel %vm995_vm4, %v1443_v28, %v992_v39  ;;  %v1004_v45 = vmul.f32 %v1447_v40, %v791_v30  ;;  %vm1009_vm7 = vweird.f32 %v1447_v40 }
 0x246   : > { %v1001_v10 = vsel %vm998_vm5, %v1000_v27, %v996_v44  ;;  %1448 = vrcp.f32 %v792_v43  ;;  %vm1010_vm9 = vmor %vm1008_vm8, %vm1009_vm7  ;;  %v1029_v59 = vand.u32 2147483648, %v792_v43  ;;  %v1027_v62 = vand.u32 2147483647, %v792_v43 }
 0x247   : > { %v1062_v20 = vmul.f32 %v1437_v8, %v1001_v10  ;;  %v1005_v46 = vsub.f32 1.0, %v1004_v45  ;;  %vm1023_vm13 = vweird.f32 %v792_v43 }
 0x248   : > { %v1030_v1 = vor.u32 1.1754944e-38, %v1029_v59  ;;  %vm1028_vm15 = vcmp.eq.f32.partialorder %v1027_v62, 8.507059e+37 }
 0x249   : > { %v1078_v49 = vsel %vm1046_vm6, %v1001_v10, %v1062_v20  ;;  %v1006_v50 = vmul.f32 %v1447_v40, %v1005_v46 }
 0x24a   : > { %1094 = vst [vmem:[%s1732_s20 + $0x68] sm:$0xff] %v1078_v49 }
 0x24b   : > { %v1007_v52 = vadd.f32 %v1447_v40, %v1006_v50 }
 0x24c   : > { %v1449_v53 = vpop.eup %1448 }
 0x24d   : > { %v1011_v56 = vsel %vm1010_vm9, %v1447_v40, %v1007_v52  ;;  %v1019_v25 = vmul.f32 %v1449_v53, %v792_v43  ;;  %vm1024_vm12 = vweird.f32 %v1449_v53 }
 0x24e   : > { %v1016_v22 = vsel %vm1013_vm10, %v1015_v55, %v1011_v56  ;;  %vm1025_vm14 = vmor %vm1023_vm13, %vm1024_vm12 }
 0x24f   : > { %v1063_v57 = vmul.f32 %v1441_v23, %v1016_v22  ;;  %v1020_v41 = vsub.f32 1.0, %v1019_v25 }
 0x251   : > { %v1079_v60 = vsel %vm1047_vm11, %v1016_v22, %v1063_v57  ;;  %v1021_v61 = vmul.f32 %v1449_v53, %v1020_v41 }
 0x252   : > { %1095 = vst [vmem:[%s1732_s20 + $0x70] sm:$0xff] %v1079_v60 }
 0x253   : > { %v1022_v63 = vadd.f32 %v1449_v53, %v1021_v61 }
 0x255   : > { %v1026_v2 = vsel %vm1025_vm14, %v1449_v53, %v1022_v63 }
 0x256   : > { %v1031_v0 = vsel %vm1028_vm15, %v1030_v1, %v1026_v2 }
 0x257   : > { %v1064_v3 = vmul.f32 %v1445_v38, %v1031_v0 }
 0x259   : > { %v1080_v47 = vsel %vm1048_vm0, %v1031_v0, %v1064_v3 }
 0x25a   : > { %1096 = vst [vmem:[%s1732_s20 + $0x78] sm:$0xff] %v1080_v47 }
 0x25b   : > { %1477 = shalt.err (!%p1474_p3)
}
 0x25c   : > { %s1514_s18 = smov 128   ;;  %s1515_s20 = smov 8  }
 0x25d   : > { %1342 = dma.vmem_to_hbm [thread:$0]  (%p1594_p5), %s1111_s9, 2048, %s1113_s28, %s1098_s21, %s1514_s18, %s1514_s18, %s1515_s20  }
 0x25e PF: > { %p1348_p4 = scmp.ge.s32.totalorder %s1512_s27, 2  ;;  %s1127_s23 = sand.u32 1, %s1500_s24  }
 0x25f   : > { %s1128_s29 = scalar_lea.sflag [#allocation3], %s1127_s23 }
 0x260   : > { %p1345_p7 = pnand %p1348_p4, %p1598_p6 }
 0x262   : > { %p1346_p8 = pneg %p1345_p7 }
 0x264   : > { %1495 = dma.done.wait (%p1346_p8), %s1128_s29, 2048  }
 0x265   : > { %1497 = vsyncadd (%p1346_p8), %s1128_s29, 4294965248  ;;  %p17_p9 = scmp.ge.s32.totalorder %s1581_s30, 6   ;;  %s1886_s24 = smov %s1504_s25 }
 0x266   : > { %s1887_s25 = smov %s1508_s26  ;;  %s1888_s26 = smov %s1592_s10 }
 0x267   : > { %s1889_s27 = smov %s1581_s30  ;;  %19 = sbr.rel (!%p17_p9) target bundleno = 3 (0x3), region = 83 }
 0x26c   :  { %1134 = vsyncpa [#allocation3], 1 }
 0x26d   :  { %1136 = vsyncpa [#allocation3 + $0x1], 1 }

</bundles_post_ra>
